<compile_context>
chip_gen: v7x
topology: tpu7x:2x2x1
jax: 0.10.0
libtpu: 0.0.40
codegen_flags: <defaults>
</compile_context>

<pallas_src>
import functools
import math

import jax
import jax.numpy as jnp
from jax import lax
from jax.experimental import pallas as pl
from jax.experimental.pallas import tpu as pltpu


def _round_up(v, m):
    return (v + m - 1) // m * m


# ----------------------------------------------------------------------------
# Kernel 1: dense linear + attention projections (tiled over node rows).
# ----------------------------------------------------------------------------
def proj_kernel(x_ref, w_ref, b_ref, a_src_ref, a_tar_ref,
                feat_ref, esrc_ref, etar_ref, eself_ref, *, negative_slope):
    # feat = x @ W^T + b.  The wrapper plants 1.0 in bias column F (its weight
    # column is zero), so feat[:, F] == 1 exactly; kernel 2 recovers the
    # per-target attention sum from that column of its matmul for free.
    feat = jnp.dot(x_ref[...], w_ref[...],
                   preferred_element_type=jnp.float32) + b_ref[...]       # [tt, Fp]
    feat_ref[...] = feat.astype(jnp.bfloat16)                             # bf16 for MXU

    dn = (((1,), (1,)), ((), ()))            # contract the Fp axis of both operands
    # att rows >= F are zero-padded, so the planted ones column never leaks
    # into the attention logits.
    # e_src as a lane-dense row (1, tt): broadcasts along the source (lane) axis.
    esrc_ref[...] = lax.dot_general(a_src_ref[...], feat, dn,
                                    preferred_element_type=jnp.float32)   # [1, tt]
    # e_tar as a column (tt, 1): broadcasts along the target (sublane) axis.
    etar_ref[...] = lax.dot_general(feat, a_tar_ref[...], dn,
                                    preferred_element_type=jnp.float32)   # [tt, 1]
    # e_self = exp(leaky_relu(e_src + e_tar)) per node.
    s_self = lax.dot_general(feat, a_src_ref[...] + a_tar_ref[...], dn,
                             preferred_element_type=jnp.float32)          # [tt, 1]
    s_self = jnp.maximum(s_self, negative_slope * s_self)
    eself_ref[...] = jnp.exp(s_self)


# ----------------------------------------------------------------------------
# Kernel 2: masked attention + aggregation over (target tile, source tile).
# ----------------------------------------------------------------------------
def agg_kernel(counts_ref, adj_ref, feat_s_ref, e_src_ref, e_tar_ref,
               feat_t_ref, e_self_ref, out_ref, acc_ref,
               *, negative_slope, ones_col):
    i = pl.program_id(0)
    k = pl.program_id(1)

    @pl.when(k == 0)
    def _():
        acc_ref[...] = jnp.zeros_like(acc_ref)

    # Skip all per-element work (exp / selects / MXU matmul) for edge-free tiles.
    @pl.when(counts_ref[i, k] > 0)
    def _():
        adjf = adj_ref[...].astype(jnp.float32)               # int8 counts -> f32
        s = e_tar_ref[...] + e_src_ref[...]                   # [tt,1]+[1,ts] -> [tt,ts]
        s = jnp.maximum(s, negative_slope * s)                # leaky_relu (mul+max)
        s = jnp.where(adjf > 0, s, -1e30)                     # mask non-edges BEFORE exp
        e_edge = (jnp.exp(s) * adjf).astype(jnp.bfloat16)     # multiplicity applied
        # bf16 x bf16 -> f32 accumulate on the MXU.  Column `ones_col` of
        # feat_s is all ones, so acc[:, ones_col] doubles as the e_sum.
        acc_ref[...] += jnp.dot(e_edge, feat_s_ref[...],
                                preferred_element_type=jnp.float32)

    @pl.when(k == pl.num_programs(1) - 1)
    def _():
        e_self = e_self_ref[...]                                            # [tt, 1]
        num = acc_ref[...] + e_self * feat_t_ref[...].astype(jnp.float32)   # [tt, Fp]
        e_sum = num[:, ones_col:ones_col + 1]                  # sum(e) + e_self
        inv = pl.reciprocal(e_sum, approx=True)                # EUP slot
        inv = inv * (2.0 - e_sum * inv)                        # Newton -> ~f32 exact
        out_ref[...] = (num * inv).astype(out_ref.dtype)


# ----------------------------------------------------------------------------
# Wrapper (glue + the two pallas_calls).
# ----------------------------------------------------------------------------
def gat_conv_pallas(x, edge_index, weight, bias, att, *, negative_slope=0.2,
                    tile_t=512, tile_s=1024):
    """refGATConv forward (flow='target_to_source', eval mode, concat=True).

    x:      [N, Cin]     weight: [F, Cin]   bias: [F]   att: [F, 2]
    edge_index: int32 [2, E]  (row 0 = target, row 1 = source)
    returns [N, F] float32
    """
    N, Cin = x.shape
    F = weight.shape[0]

    # Lane-dense feature dim with at least one spare column for the planted ones.
    Fp = _round_up(F + 1, 128)

    # Tile selection: keep >= 2 target tiles (v7x megacore), make ts a multiple
    # of tt so Np only pads to a multiple of ts (minimal quadratic adj growth).
    Np = _round_up(N, 128)
    tt = min(tile_t, Np)
    if Np // tt < 2 and Np >= 256:
        tt = max(128, (Np // 2) // 128 * 128)
    Np = _round_up(N, tt)
    ts = min(tile_s, Np)
    ts = max(tt, (ts // tt) * tt)
    while Np % ts != 0:
        ts -= tt

    # Glue: padded parameters.  Bias column F carries the constant 1.0.
    xp = jnp.zeros((Np, Cin), jnp.float32).at[:N, :].set(x)
    wp = jnp.zeros((Cin, Fp), jnp.float32).at[:, :F].set(weight.T)
    bp = jnp.zeros((1, Fp), jnp.float32).at[0, :F].set(bias).at[0, F].set(1.0)
    a_src = jnp.zeros((1, Fp), jnp.float32).at[0, :F].set(att[:, 0])
    a_tar = jnp.zeros((1, Fp), jnp.float32).at[0, :F].set(att[:, 1])

    # Dense int8 adjacency A[tar, src] = edge multiplicity (exact up to 127),
    # plus per-(target-tile, source-tile) edge counts for block-sparse skipping.
    # (Scatter is staged in int32 for robust lowering, then narrowed to int8 so
    #  the kernel streams 1 byte/element.)
    # TODO(synk): cache adj/counts across calls (transductive graphs) and replace
    # the dense-adjacency path with a scalar-prefetched CSR gather kernel for
    # genuinely sparse graphs (O(E*F) instead of O(N^2)).
    tar_index, src_index = edge_index[0], edge_index[1]
    adj = (jnp.zeros((Np, Np), jnp.int32)
           .at[tar_index, src_index].add(1)).astype(jnp.int8)
    counts = (jnp.zeros((Np // tt, Np // ts), jnp.int32)
              .at[tar_index // tt, src_index // ts].add(1))

    # ---- kernel 1: projection ----
    proj = pl.pallas_call(
        functools.partial(proj_kernel, negative_slope=negative_slope),
        out_shape=(jax.ShapeDtypeStruct((Np, Fp), jnp.bfloat16),   # feat (bf16)
                   jax.ShapeDtypeStruct((1, Np), jnp.float32),     # e_src row
                   jax.ShapeDtypeStruct((Np, 1), jnp.float32),     # e_tar col
                   jax.ShapeDtypeStruct((Np, 1), jnp.float32)),    # e_self col
        grid_spec=pltpu.PrefetchScalarGridSpec(
            num_scalar_prefetch=0,
            grid=(Np // tt,),
            in_specs=[pl.BlockSpec((tt, Cin), lambda i: (i, 0)),
                      pl.BlockSpec((Cin, Fp), lambda i: (0, 0)),
                      pl.BlockSpec((1, Fp), lambda i: (0, 0)),
                      pl.BlockSpec((1, Fp), lambda i: (0, 0)),
                      pl.BlockSpec((1, Fp), lambda i: (0, 0))],
            out_specs=[pl.BlockSpec((tt, Fp), lambda i: (i, 0)),
                       pl.BlockSpec((1, tt), lambda i: (0, i)),
                       pl.BlockSpec((tt, 1), lambda i: (i, 0)),
                       pl.BlockSpec((tt, 1), lambda i: (i, 0))]),
        compiler_params=pltpu.CompilerParams(
            dimension_semantics=("parallel",),
            vmem_limit_bytes=48 * 1024 * 1024),
    )
    feat, e_src_row, e_tar_col, e_self = proj(xp, wp, bp, a_src, a_tar)

    # ---- kernel 2: masked attention + aggregation ----
    agg = pl.pallas_call(
        functools.partial(agg_kernel, negative_slope=negative_slope, ones_col=F),
        out_shape=jax.ShapeDtypeStruct((Np, Fp), jnp.float32),
        grid_spec=pltpu.PrefetchScalarGridSpec(
            num_scalar_prefetch=1,                           # counts -> SMEM
            grid=(Np // tt, Np // ts),
            in_specs=[
                pl.BlockSpec((tt, ts), lambda i, k, c: (i, k)),   # adj tile (int8)
                pl.BlockSpec((ts, Fp), lambda i, k, c: (k, 0)),   # feat (source rows, bf16)
                pl.BlockSpec((1, ts), lambda i, k, c: (0, k)),    # e_src row
                pl.BlockSpec((tt, 1), lambda i, k, c: (i, 0)),    # e_tar col
                pl.BlockSpec((tt, Fp), lambda i, k, c: (i, 0)),   # feat (target rows, bf16)
                pl.BlockSpec((tt, 1), lambda i, k, c: (i, 0)),    # e_self
            ],
            out_specs=pl.BlockSpec((tt, Fp), lambda i, k, c: (i, 0)),
            scratch_shapes=[pltpu.VMEM((tt, Fp), jnp.float32)]),  # acc (e_sum folded in)
        compiler_params=pltpu.CompilerParams(
            dimension_semantics=("parallel", "arbitrary"),
            vmem_limit_bytes=48 * 1024 * 1024),
    )
    out = agg(counts, adj, feat, e_src_row, e_tar_col, feat, e_self)
    return out[:N, :F]


# ----------------------------------------------------------------------------
# Pure-JAX reference (mirror of refGATConv.forward, eval mode).
# ----------------------------------------------------------------------------
def gat_conv_ref(x, edge_index, weight, bias, att, negative_slope=0.2):
    N = x.shape[0]
    tar_index = edge_index[0]
    src_index = edge_index[1]
    feat = x @ weight.T + bias
    e_pre = feat @ att                         # [N, 2]
    e_src = e_pre[:, 0:1]
    e_tar = e_pre[:, 1:2]
    lrelu = lambda v: jnp.where(v > 0, v, negative_slope * v)
    e = jnp.exp(lrelu(e_src[src_index] + e_tar[tar_index]))          # [E, 1]
    e_self = jnp.exp(lrelu(e_src + e_tar))                           # [N, 1]
    e_sum = jnp.zeros((N, 1), jnp.float32).at[tar_index].add(e) + e_self
    alpha_self = e_self / e_sum
    alpha = e / e_sum[tar_index]
    out = jnp.zeros_like(feat).at[tar_index].add(feat[src_index] * alpha)
    out = out + feat * alpha_self
    return out


if __name__ == "__main__":
    N = 256           # nodes
    Cin = 32          # in_channels
    heads = 2
    out_channels = 16
    F = heads * out_channels
    E = 512           # edges
    negative_slope = 0.2

    key = jax.random.PRNGKey(0)
    kx, kw, kb, ka, ks, kt = jax.random.split(key, 6)

    x = jax.random.normal(kx, (N, Cin), dtype=jnp.float32)

    # dense.weight: [F, Cin], glorot; dense.bias: torch default; att: [F, 2], glorot.
    stdv_w = math.sqrt(6.0 / (F + Cin))
    weight = jax.random.uniform(kw, (F, Cin), jnp.float32, -stdv_w, stdv_w)
    bound_b = 1.0 / math.sqrt(Cin)
    bias = jax.random.uniform(kb, (F,), jnp.float32, -bound_b, bound_b)
    stdv_a = math.sqrt(6.0 / (F + 2))
    att = jax.random.uniform(ka, (F, 2), jnp.float32, -stdv_a, stdv_a)

    # Random edge list; flow='target_to_source' -> edge_index[0]=target, [1]=source.
    tar_index = jax.random.randint(kt, (E,), 0, N, dtype=jnp.int32)
    src_index = jax.random.randint(ks, (E,), 0, N, dtype=jnp.int32)
    edge_index = jnp.stack([tar_index, src_index], axis=0)

    # Small tiles so the test exercises the 2-D accumulator grid (grid = (2, 2))
    # and the block-sparse (counts) skip path.
    out = gat_conv_pallas(x, edge_index, weight, bias, att,
                          negative_slope=negative_slope, tile_t=128, tile_s=128)
    out = jax.block_until_ready(out)

    ref = gat_conv_ref(x, edge_index, weight, bias, att, negative_slope)
    ref = jax.block_until_ready(ref)

    assert out.shape == (N, F) and out.dtype == jnp.float32
    err = float(jnp.max(jnp.abs(out - ref)))
    # bf16 MXU operands (feat / e_edge) with f32 accumulation -> looser tolerance.
    assert jnp.allclose(out, ref, rtol=3e-2, atol=3e-2), err

    print("KERNEL_OK")
</pallas_src>

<mosaic_0001>
module attributes {stable_mosaic.version = 11 : i64} {
  func.func @proj_kernel(%arg0: i32, %arg1: memref<128x32xf32, #tpu.memory_space<vmem>>, %arg2: memref<32x128xf32, #tpu.memory_space<vmem>>, %arg3: memref<1x128xf32, #tpu.memory_space<vmem>>, %arg4: memref<1x128xf32, #tpu.memory_space<vmem>>, %arg5: memref<1x128xf32, #tpu.memory_space<vmem>>, %arg6: memref<128x128xbf16, #tpu.memory_space<vmem>>, %arg7: memref<1x128xf32, #tpu.memory_space<vmem>>, %arg8: memref<128x1xf32, #tpu.memory_space<vmem>>, %arg9: memref<128x1xf32, #tpu.memory_space<vmem>>) attributes {dimension_semantics = [#tpu.dimension_semantics<parallel>], iteration_bounds = array<i64: 2>, scalar_prefetch = 0 : i64, scratch_operands = 0 : i64, tpu.core_type = #tpu.core_type<tc>, window_params = [{transform_indices = @transform_0, window_bounds = array<i64: 128, 32>}, {pipeline_mode = #tpu.pipeline_mode<synchronous>, transform_indices = @transform_1, window_bounds = array<i64: 32, 128>}, {pipeline_mode = #tpu.pipeline_mode<synchronous>, transform_indices = @transform_2, window_bounds = array<i64: 1, 128>}, {pipeline_mode = #tpu.pipeline_mode<synchronous>, transform_indices = @transform_3, window_bounds = array<i64: 1, 128>}, {pipeline_mode = #tpu.pipeline_mode<synchronous>, transform_indices = @transform_4, window_bounds = array<i64: 1, 128>}, {transform_indices = @transform_5, window_bounds = array<i64: 128, 128>}, {transform_indices = @transform_6, window_bounds = array<i64: 1, 128>}, {transform_indices = @transform_7, window_bounds = array<i64: 128, 1>}, {transform_indices = @transform_8, window_bounds = array<i64: 128, 1>}]} {
    %c0 = arith.constant 0 : index
    %c0_0 = arith.constant 0 : index
    %0 = vector.load %arg1[%c0, %c0_0] : memref<128x32xf32, #tpu.memory_space<vmem>>, vector<128x32xf32>
    %c0_1 = arith.constant 0 : index
    %c0_2 = arith.constant 0 : index
    %1 = vector.load %arg2[%c0_1, %c0_2] : memref<32x128xf32, #tpu.memory_space<vmem>>, vector<32x128xf32>
    %cst = arith.constant dense<0.000000e+00> : vector<128x128xf32>
    %2 = tpu.matmul %0, %1, %cst {dimension_numbers = #tpu.dot_dimension_numbers<[1], [0], [0], [1], [0, 0, 1, 1], [], []>} : vector<128x32xf32>, vector<32x128xf32>, vector<128x128xf32> -> vector<128x128xf32>
    %c0_3 = arith.constant 0 : index
    %c0_4 = arith.constant 0 : index
    %3 = vector.load %arg3[%c0_3, %c0_4] : memref<1x128xf32, #tpu.memory_space<vmem>>, vector<1x128xf32>
    %4 = vector.broadcast %3 : vector<1x128xf32> to vector<128x128xf32>
    %5 = arith.addf %2, %4 : vector<128x128xf32>
    %6 = arith.truncf %5 : vector<128x128xf32> to vector<128x128xbf16>
    %c0_5 = arith.constant 0 : index
    %c0_6 = arith.constant 0 : index
    %7 = vector.load %arg6[%c0_5, %c0_6] : memref<128x128xbf16, #tpu.memory_space<vmem>>, vector<128x128xbf16>
    tpu.vector_store %arg6[%c0_5, %c0_6], %6 {strides = array<i32>} : memref<128x128xbf16, #tpu.memory_space<vmem>>, vector<128x128xbf16>,
    %c0_7 = arith.constant 0 : index
    %c0_8 = arith.constant 0 : index
    %8 = vector.load %arg4[%c0_7, %c0_8] : memref<1x128xf32, #tpu.memory_space<vmem>>, vector<1x128xf32>
    %cst_9 = arith.constant dense<0.000000e+00> : vector<1x128xf32>
    %9 = tpu.matmul %8, %5, %cst_9 {dimension_numbers = #tpu.dot_dimension_numbers<[1], [1], [0], [0], [0, 0, 1, 0], [], []>} : vector<1x128xf32>, vector<128x128xf32>, vector<1x128xf32> -> vector<1x128xf32>
    %c0_10 = arith.constant 0 : index
    %c0_11 = arith.constant 0 : index
    %10 = vector.load %arg7[%c0_10, %c0_11] : memref<1x128xf32, #tpu.memory_space<vmem>>, vector<1x128xf32>
    tpu.vector_store %arg7[%c0_10, %c0_11], %9 {strides = array<i32>} : memref<1x128xf32, #tpu.memory_space<vmem>>, vector<1x128xf32>,
    %c0_12 = arith.constant 0 : index
    %c0_13 = arith.constant 0 : index
    %11 = vector.load %arg5[%c0_12, %c0_13] : memref<1x128xf32, #tpu.memory_space<vmem>>, vector<1x128xf32>
    %cst_14 = arith.constant dense<0.000000e+00> : vector<128x1xf32>
    %12 = tpu.matmul %5, %11, %cst_14 {dimension_numbers = #tpu.dot_dimension_numbers<[1], [1], [0], [0], [0, 0, 1, 0], [], []>} : vector<128x128xf32>, vector<1x128xf32>, vector<128x1xf32> -> vector<128x1xf32>
    %c0_15 = arith.constant 0 : index
    %c0_16 = arith.constant 0 : index
    %13 = vector.load %arg8[%c0_15, %c0_16] : memref<128x1xf32, #tpu.memory_space<vmem>>, vector<128x1xf32>
    tpu.vector_store %arg8[%c0_15, %c0_16], %12 {strides = array<i32>} : memref<128x1xf32, #tpu.memory_space<vmem>>, vector<128x1xf32>,
    %c0_17 = arith.constant 0 : index
    %c0_18 = arith.constant 0 : index
    %14 = vector.load %arg4[%c0_17, %c0_18] : memref<1x128xf32, #tpu.memory_space<vmem>>, vector<1x128xf32>
    %c0_19 = arith.constant 0 : index
    %c0_20 = arith.constant 0 : index
    %15 = vector.load %arg5[%c0_19, %c0_20] : memref<1x128xf32, #tpu.memory_space<vmem>>, vector<1x128xf32>
    %16 = arith.addf %14, %15 : vector<1x128xf32>
    %cst_21 = arith.constant dense<0.000000e+00> : vector<128x1xf32>
    %17 = tpu.matmul %5, %16, %cst_21 {dimension_numbers = #tpu.dot_dimension_numbers<[1], [1], [0], [0], [0, 0, 1, 0], [], []>} : vector<128x128xf32>, vector<1x128xf32>, vector<128x1xf32> -> vector<128x1xf32>
    %cst_22 = arith.constant 2.000000e-01 : f32
    %18 = vector.broadcast %cst_22 : f32 to vector<128x1xf32>
    %19 = arith.mulf %18, %17 : vector<128x1xf32>
    %20 = arith.maximumf %17, %19 : vector<128x1xf32>
    %21 = math.exp %20 : vector<128x1xf32>
    %c0_23 = arith.constant 0 : index
    %c0_24 = arith.constant 0 : index
    %22 = vector.load %arg9[%c0_23, %c0_24] : memref<128x1xf32, #tpu.memory_space<vmem>>, vector<128x1xf32>
    tpu.vector_store %arg9[%c0_23, %c0_24], %21 {strides = array<i32>} : memref<128x1xf32, #tpu.memory_space<vmem>>, vector<128x1xf32>,
    return
  }
  func.func @transform_0(%arg0: i32) -> (i32, i32) {
    %c0_i32 = arith.constant 0 : i32
    %c0_i32_0 = arith.constant 0 : i32
    return %arg0, %c0_i32 : i32, i32
  }
  func.func @transform_1(%arg0: i32) -> (i32, i32) {
    %c0_i32 = arith.constant 0 : i32
    %c0_i32_0 = arith.constant 0 : i32
    %c0_i32_1 = arith.constant 0 : i32
    return %c0_i32, %c0_i32_0 : i32, i32
  }
  func.func @transform_2(%arg0: i32) -> (i32, i32) {
    %c0_i32 = arith.constant 0 : i32
    %c0_i32_0 = arith.constant 0 : i32
    %c0_i32_1 = arith.constant 0 : i32
    return %c0_i32, %c0_i32_0 : i32, i32
  }
  func.func @transform_3(%arg0: i32) -> (i32, i32) {
    %c0_i32 = arith.constant 0 : i32
    %c0_i32_0 = arith.constant 0 : i32
    %c0_i32_1 = arith.constant 0 : i32
    return %c0_i32, %c0_i32_0 : i32, i32
  }
  func.func @transform_4(%arg0: i32) -> (i32, i32) {
    %c0_i32 = arith.constant 0 : i32
    %c0_i32_0 = arith.constant 0 : i32
    %c0_i32_1 = arith.constant 0 : i32
    return %c0_i32, %c0_i32_0 : i32, i32
  }
  func.func @transform_5(%arg0: i32) -> (i32, i32) {
    %c0_i32 = arith.constant 0 : i32
    %c0_i32_0 = arith.constant 0 : i32
    return %arg0, %c0_i32 : i32, i32
  }
  func.func @transform_6(%arg0: i32) -> (i32, i32) {
    %c0_i32 = arith.constant 0 : i32
    %c0_i32_0 = arith.constant 0 : i32
    return %c0_i32, %arg0 : i32, i32
  }
  func.func @transform_7(%arg0: i32) -> (i32, i32) {
    %c0_i32 = arith.constant 0 : i32
    %c0_i32_0 = arith.constant 0 : i32
    return %arg0, %c0_i32 : i32, i32
  }
  func.func @transform_8(%arg0: i32) -> (i32, i32) {
    %c0_i32 = arith.constant 0 : i32
    %c0_i32_0 = arith.constant 0 : i32
    return %arg0, %c0_i32 : i32, i32
  }
}

</mosaic_0001>

<bundles_post_ra>
// kernel: tpu_custom_call.1
= control target key start
LH: loop header
LB: loop body
LE: loop exit
PB: predicated region body
PF: predicated region fallthrough
CT: control target
= control target key end

     0   :  { %14 = vsyncpa [#allocation3], 0  ;;  %s1957_s0 = inlined_call_operand.vmem [shape: f32[256,32], index: 0, kind: input, shape index: {}]   ;;  %s1958_s1 = inlined_call_operand.vmem [shape: f32[32,128], index: 1, kind: input, shape index: {}]   ;;  %s1959_s2 = inlined_call_operand.vmem [shape: f32[1,128], index: 2, kind: input, shape index: {}]   ;;  %s1960_s3 = inlined_call_operand.vmem [shape: f32[1,128], index: 3, kind: input, shape index: {}]   ;;  %s1961_s4 = inlined_call_operand.vmem [shape: f32[1,128], index: 4, kind: input, shape index: {}]   ;;  %s1962_s5 = inlined_call_operand.hbm [shape: bf16[256,128], index: 5, kind: output, shape index: {0}]   ;;  %s1963_s6 = inlined_call_operand.hbm [shape: f32[1,256], index: 6, kind: output, shape index: {1}]   ;;  %s1964_s7 = inlined_call_operand.vmem [shape: f32[256,1], index: 7, kind: output, shape index: {2}]   ;;  %s1965_s8 = inlined_call_operand.vmem [shape: f32[256,1], index: 8, kind: output, shape index: {3}]  }
   0x1   :  { %16 = vsyncpa [#allocation3 + $0x1], 0 }
   0x2   :  { %17 = vsyncpa [#allocation5], 0 }
   0x3   :  { %19 = vsyncpa [#allocation5 + $0x1], 0  ;;  %s1594_s27 = smov 0   ;;  %s1596_s28 = smov 0  }
   0x4   :  { %s1598_s29 = smov 0   ;;  %s1600_s30 = smov 0  }
   0x5 LB: > { %s1615_s9 = sadd.s32 4294967295, %s1540_s30   ;;  %s1114_s10 = sadd.s32 4294967294, %s1540_s30   ;;  %s1540_s30 = sphi %s1600_s30, %s1972_s30   ;;  %s1536_s29 = sphi %s1598_s29, %s1971_s29   ;;  %s1532_s28 = sphi %s1596_s28, %s1970_s28   ;;  %s1528_s27 = sphi %s1594_s27, %s1969_s27  }
   0x6   : > { %s1619_s11 = sadd.s32 1, %s1540_s30   ;;  %s142_s12 = sadd.s32 1, %s1536_s29 }
   0x7   : > { %s139_s13 = ssub.s32 %s1540_s30, %s1619_s11  ;;  %p152_p0 = scmp.ne.s32.totalorder %s1536_s29, %s1532_s28 }
   0x8   : > { %p140_p1 = scmp.eq.s32.totalorder %s139_s13, 0  ;;  %p153_p2 = scmp.eq.s32.totalorder %s1615_s9, 1 }
   0x9   : > { %p158_p3 = scmp.ne.s32.totalorder %s1532_s28, %s1528_s27  ;;  %p159_p4 = scmp.eq.s32.totalorder %s1114_s10, 1 }
   0xa   : > { %s1630_s14 = scalar_select %p140_p1, %s1536_s29, %s142_s12  }
   0xb   : > { %p1632_p5 = por %p153_p2, %p152_p0  ;;  %p1636_p6 = por %p159_p4, %p158_p3 }
   0xc   : > { %p1117_p7 = scmp.ge.s32.totalorder %s1540_s30, 1  ;;  %p276_p8 = scmp.lt.s32.totalorder %s1540_s30, 3 }
   0xe   : > { %p277_p9 = pnand %p1117_p7, %p276_p8 }
   0xf   : > { %v359_v0 = vld [vmem:[%s1958_s1] sm:$0xff] (!%p277_p9)  ;;  %v360_v1 = vld [vmem:[%s1958_s1 + $0x8] sm:$0xff] (!%p277_p9)  ;;  %v361_v2 = vld [vmem:[%s1958_s1 + $0x10] sm:$0xff] (!%p277_p9)  ;;  %s1652_s23 = sshll.u32 (!%p277_p9), %s1615_s9, 4  ;;  %vm370_vm0 = vcmask (!%p277_p9), 261120   ;;  %v1542_v22 = vmov (!%p277_p9), 0.0|0.0   ;;  %v792_v24 = vlaneseq (!%p277_p9) }
  0x10   : > { %280 = sbr.rel (%p277_p9) target bundleno = 535 (0x217), region = 40  ;;  %v1333_v3 = vpack.c.bf16 (!%p277_p9), %v360_v1, %v359_v0  ;;  %v362_v4 = vld [vmem:[%s1958_s1 + $0x18] sm:$0xff] (!%p277_p9)  ;;  %p325_p10 = scmp.lt.s32.totalorder (!%p277_p9), %s1652_s23, 31  ;;  %1341 = vmatprep.subr.bf16.mxu1 (!%p277_p9), %v1542_v22  ;;  %vm1543_vm1 = vmmov (!%p277_p9), 0   ;;  %v1544_v23 = vmov (!%p277_p9), 0.0   ;;  %vm771_vm2 = vcmask (!%p277_p9), 7168  }
  0x11   : > { %v1337_v5 = vpack.c.bf16 (!%p277_p9), %v362_v4, %v361_v2  ;;  %1330 = vmatprep.mubr.msk.f32.mxu1 (!%p277_p9), %vm1543_vm1, %v1544_v23  ;;  %v793_v25 = vshrl.u32 (!%p277_p9), %v792_v24, 7  ;;  %v788_v26 = vld [vmem:[%s1960_s3] sm:$0x1] (!%p277_p9)  ;;  %s1707_s22 = sand.u32 (!%p277_p9), 1, %s1532_s28   ;;  %s1181_s25 = sshll.u32 (!%p277_p9), %s1615_s9, 10 }
  0x12   : > { %1334 = vmatprep.subr.bf16.mxu0 (!%p277_p9), %v1333_v3  ;;  %v789_v27 = vld [vmem:[%s1961_s4] sm:$0x1] (!%p277_p9)  ;;  %s1118_s13 = sshll.u32 (!%p277_p9), %s1707_s22, 6  ;;  %s1545_s20 = smov (!%p277_p9), [#allocation2]  }
  0x13   : > { %1336 = vmatpush3.bf16.msra.mxu0 (!%p277_p9), %v1333_v3  ;;  %v790_v28 = vadd.f32 (!%p277_p9), %v789_v27, %v788_v26  ;;  %v794_v29 = vsub.s32 (!%p277_p9), 0, %v793_v25  ;;  %v1712_v30 = vld [vmem:[%s1959_s2] ss:$0 sm:$0xff] (!%p277_p9)  ;;  %s1450_s21 = sshll.u32 (!%p277_p9), %s1545_s20, 4  ;;  %s1451_s21 = int_to_ptr.vmem [resolvable:$false] %s1450_s21 }
  0x14   : > { %1338 = vmatprep.subr.bf16.mxu0 (!%p277_p9), %v1337_v5  ;;  %v1719_v33 = vld [vmem:[%s1961_s4] ss:$0 sm:$0xff] (!%p277_p9) }
  0x15   : > { %v1714_v31 = vrot.slane (!%p277_p9), %v790_v28, %v794_v29 }
  0x17   : > { %s326_s26 = scalar_select %p325_p10, %s1652_s23, 31  ;;  %1340 = vmatpush3.bf16.msra.mxu0 %v1337_v5 }
  0x19   : > { %s1659_s10 = sshll.u32 %s326_s26, 3 }
  0x1a   : > { %s1665_s17 = scalar_lea.vmem %s1957_s0, %s1659_s10  ;;  %s1804_s24 = scalar_lea.vmem %s1964_s7, %s1659_s10 }
  0x1b   : > { %v343_v6 = vld [vmem:[%s1665_s17] sm:$0xff]  ;;  %v344_v7 = vld [vmem:[%s1665_s17 + $0x8] sm:$0xff]  ;;  %v345_v8 = vld [vmem:[%s1665_s17 + $0x10] sm:$0xff] }
  0x1c   : > { %1274 = vmatprep.mubr.msk.f32.mxu0 %vm370_vm0, %v343_v6  ;;  %v346_v9 = vld [vmem:[%s1665_s17 + $0x18] sm:$0xff]  ;;  %v347_v10 = vld [vmem:[%s1665_s17 + $0x20] sm:$0xff]  ;;  %v348_v11 = vld [vmem:[%s1665_s17 + $0x28] sm:$0xff] }
  0x1d   : > { %1275 = vmatmul.mubr.msk.f32.vlgmr.msra.gmra.mrb[0].mxu0 %vm370_vm0, %v344_v7  ;;  %v349_v12 = vld [vmem:[%s1665_s17 + $0x30] sm:$0xff]  ;;  %v350_v13 = vld [vmem:[%s1665_s17 + $0x38] sm:$0xff]  ;;  %v351_v14 = vld [vmem:[%s1665_s17 + $0x40] sm:$0xff] }
  0x1e   : > { %1277 = vmatprep.mubr.msk.f32.mxu0 %vm370_vm0, %v345_v8  ;;  %v352_v15 = vld [vmem:[%s1665_s17 + $0x48] sm:$0xff]  ;;  %v353_v16 = vld [vmem:[%s1665_s17 + $0x50] sm:$0xff]  ;;  %v354_v17 = vld [vmem:[%s1665_s17 + $0x58] sm:$0xff] }
  0x1f   : > { %v355_v18 = vld [vmem:[%s1665_s17 + $0x60] sm:$0xff]  ;;  %v356_v19 = vld [vmem:[%s1665_s17 + $0x68] sm:$0xff]  ;;  %v357_v20 = vld [vmem:[%s1665_s17 + $0x70] sm:$0xff] }
  0x20   : > { %v358_v21 = vld [vmem:[%s1665_s17 + $0x78] sm:$0xff]  ;;  %s1727_s17 = scalar_lea.vmem [#allocation2], %s1118_s13  ;;  %s1812_s13 = scalar_lea.hbm %s1962_s5, %s1181_s25 }
  0x21   : > { %1278 = vmatmul.mubr.msk.f32.gmra.mrb[2].mxu0 %vm370_vm0, %v346_v9  ;;  %s953_s18 = sshll.u32 %s1727_s17, 4  ;;  %s1452_s25 = scalar_lea.vmem %s1451_s21, 2048  ;;  %s1819_s18 = int_to_ptr.vmem [resolvable:$true] %s953_s18 }
  0x22   : > { %1280 = vmatprep.mubr.msk.f32.mxu0 %vm370_vm0, %v347_v10  ;;  %s1446_s19 = scalar_lea.vmem %s1819_s18, 1024  ;;  %p1453_p0 = scmp.lt.s32.totalorder %s1819_s18, %s1451_s21 }
  0x23   : > { %p1447_p11 = scmp.ne.s32.totalorder %s1819_s18, %s1446_s19  ;;  %p1454_p1 = scmp.lt.s32.totalorder %s1452_s25, %s1446_s19 }
  0x25   : > { %1281 = vmatmul.mubr.msk.f32.gmra.mrb[4].mxu0 %vm370_vm0, %v348_v11  ;;  %p1448_p12 = pnand %p1447_p11, %p1632_p5  ;;  %p1455_p2 = por %p1454_p1, %p1453_p0 }
  0x26   : > { %1283 = vmatprep.mubr.msk.f32.mxu0 %vm370_vm0, %v349_v12 }
  0x27   : > { %p1449_p13 = pneg %p1448_p12 }
  0x29   : > { %1284 = vmatmul.mubr.msk.f32.gmra.mrb[6].mxu0 %vm370_vm0, %v350_v13  ;;  %p1456_p3 = pnand %p1455_p2, %p1449_p13 }
  0x2a   : > { %1286 = vmatprep.mubr.msk.f32.mxu0 %vm370_vm0, %v351_v14 }
  0x2d   : > { %1287 = vmatmul.mubr.msk.f32.gmra.mrb[8].mxu0 %vm370_vm0, %v352_v15 }
  0x2e   : > { %1289 = vmatprep.mubr.msk.f32.mxu0 %vm370_vm0, %v353_v16 }
  0x31   : > { %1290 = vmatmul.mubr.msk.f32.gmra.mrb[10].mxu0 %vm370_vm0, %v354_v17 }
  0x32   : > { %1292 = vmatprep.mubr.msk.f32.mxu0 %vm370_vm0, %v355_v18 }
  0x35   : > { %1293 = vmatmul.mubr.msk.f32.gmra.mrb[12].mxu0 %vm370_vm0, %v356_v19 }
  0x36   : > { %1295 = vmatprep.mubr.msk.f32.mxu0 %vm370_vm0, %v357_v20 }
  0x39   : > { %1296 = vmatmul.mubr.msk.f32.gmra.mrb[14].mxu0 %vm370_vm0, %v358_v21 }
  0xf0   : > { %v1276_v32 = vpop.f32.mrb[0].mxu0 }
  0xf1   : > { %v491_v34 = vadd.f32 %v1276_v32, %v1712_v30  ;;  %v485_v35 = vpop.f32.mrb[1].mxu0 }
  0xf2   : > { %v486_v36 = vadd.f32 %v1712_v30, %v485_v35 }
  0xf3   : > { %v798_v37 = vmul.f32 %v1714_v31, %v491_v34  ;;  %v724_v38 = vmul.f32 %v1719_v33, %v491_v34 }
  0xf4   : > { %v1279_v39 = vpop.f32.mrb[2].mxu0  ;;  %v1185_v40 = vpack.c.bf16 %v491_v34, %v486_v36  ;;  %v797_v45 = vmul.f32 %v1714_v31, %v486_v36  ;;  %v723_v52 = vmul.f32 %v1719_v33, %v486_v36 }
  0xf5   : > { %v501_v41 = vadd.f32 %v1279_v39, %v1712_v30  ;;  %815 = vadd.xlane.f32.xlu0 %v798_v37  ;;  %741 = vadd.xlane.f32.xlu1 %v724_v38  ;;  %v495_v42 = vpop.f32.mrb[3].mxu0 }
  0xf6   : > { %1186 = vst [vmem:[%s1727_s17] sm:$0xff] %v1185_v40   ;;  %1343 = vmatpush3.bf16.xpose.msra.mxu1 %v1185_v40  ;;  %v496_v43 = vadd.f32 %v1712_v30, %v495_v42 }
  0xf7   : > { %v800_v44 = vmul.f32 %v1714_v31, %v501_v41  ;;  %1344 = vmatprep.subr.bf16.mxu1 %v1542_v22  ;;  %v726_v48 = vmul.f32 %v1719_v33, %v501_v41 }
  0xf8   : > { %v1190_v46 = vpack.c.bf16 %v501_v41, %v496_v43  ;;  %v1282_v47 = vpop.f32.mrb[4].mxu0  ;;  %v799_v58 = vmul.f32 %v1714_v31, %v496_v43  ;;  %v725_v59 = vmul.f32 %v1719_v33, %v496_v43  ;;  %v644_v43 = vld [vmem:[%s1960_s3] sm:$0x1] }
  0xf9   : > { %819 = vadd.xlane.f32.xlu1 %v800_v44  ;;  %813 = vadd.xlane.f32.xlu0 %v797_v45  ;;  %v511_v49 = vadd.f32 %v1282_v47, %v1712_v30  ;;  %v505_v50 = vpop.f32.mrb[5].mxu0 }
  0xfa   : > { %1222 = vst [vmem:[%s1727_s17 + $0x8] sm:$0xff] %v1190_v46   ;;  %v506_v51 = vadd.f32 %v1712_v30, %v505_v50 }
  0xfb   : > { %v802_v62 = vmul.f32 %v1714_v31, %v511_v49  ;;  %v728_v8 = vmul.f32 %v1719_v33, %v511_v49 }
  0xfc   : > { %v1195_v53 = vpack.c.bf16 %v511_v49, %v506_v51  ;;  %v1285_v54 = vpop.f32.mrb[6].mxu0  ;;  %v801_v63 = vmul.f32 %v1714_v31, %v506_v51  ;;  %v727_v9 = vmul.f32 %v1719_v33, %v506_v51 }
  0xfd   : > { %745 = vadd.xlane.f32.xlu1 %v726_v48  ;;  %739 = vadd.xlane.f32.xlu0 %v723_v52  ;;  %v1740_v55 = vadd.f32 %v1285_v54, %v1712_v30  ;;  %v515_v56 = vpop.f32.mrb[7].mxu0 }
  0xfe   : > { %1346 = vmatpush3.bf16.xpose.msra.mxu1 %v1190_v46  ;;  %1223 = vst [vmem:[%s1727_s17 + $0x10] sm:$0xff] %v1195_v53   ;;  %v1744_v57 = vadd.f32 %v1712_v30, %v515_v56 }
  0xff   : > { %1347 = vmatprep.subr.bf16.mxu1 %v1542_v22  ;;  %v804_v12 = vmul.f32 %v1714_v31, %v1740_v55  ;;  %v730_v34 = vmul.f32 %v1719_v33, %v1740_v55 }
 0x100   : > { %v1288_v60 = vpop.f32.mrb[8].mxu0  ;;  %v1200_v61 = vpack.c.bf16 %v1740_v55, %v1744_v57  ;;  %v803_v13 = vmul.f32 %v1714_v31, %v1744_v57  ;;  %v729_v35 = vmul.f32 %v1719_v33, %v1744_v57 }
 0x101   : > { %817 = vadd.xlane.f32.xlu1 %v799_v58  ;;  %743 = vadd.xlane.f32.xlu0 %v725_v59  ;;  %v525_v0 = vpop.f32.mrb[9].mxu0  ;;  %v531_v1 = vadd.f32 %v1288_v60, %v1712_v30 }
 0x102   : > { %v526_v2 = vadd.f32 %v1712_v30, %v525_v0  ;;  %1224 = vst [vmem:[%s1727_s17 + $0x18] sm:$0xff] %v1200_v61  }
 0x103   : > { %v806_v19 = vmul.f32 %v1714_v31, %v531_v1  ;;  %v732_v36 = vmul.f32 %v1719_v33, %v531_v1 }
 0x104   : > { %v1291_v3 = vpop.f32.mrb[10].mxu0  ;;  %v1205_v4 = vpack.c.bf16 %v531_v1, %v526_v2  ;;  %v805_v20 = vmul.f32 %v1714_v31, %v526_v2  ;;  %v731_v37 = vmul.f32 %v1719_v33, %v526_v2 }
 0x105   : > { %823 = vadd.xlane.f32.xlu1 %v802_v62  ;;  %821 = vadd.xlane.f32.xlu0 %v801_v63  ;;  %v535_v5 = vpop.f32.mrb[11].mxu0  ;;  %v541_v6 = vadd.f32 %v1291_v3, %v1712_v30 }
 0x106   : > { %1349 = vmatpush3.bf16.xpose.msra.mxu1 %v1195_v53  ;;  %v536_v7 = vadd.f32 %v1712_v30, %v535_v5  ;;  %1225 = vst [vmem:[%s1727_s17 + $0x20] sm:$0xff] %v1205_v4  }
 0x107   : > { %1350 = vmatprep.subr.bf16.mxu1 %v1542_v22  ;;  %v808_v26 = vmul.f32 %v1714_v31, %v541_v6 }
 0x108   : > { %v1294_v10 = vpop.f32.mrb[12].mxu0  ;;  %v1210_v11 = vpack.c.bf16 %v541_v6, %v536_v7  ;;  %v807_v27 = vmul.f32 %v1714_v31, %v536_v7  ;;  %v733_v38 = vmul.f32 %v1719_v33, %v536_v7 }
 0x109   : > { %749 = vadd.xlane.f32.xlu1 %v728_v8  ;;  %747 = vadd.xlane.f32.xlu0 %v727_v9  ;;  %v545_v14 = vpop.f32.mrb[13].mxu0  ;;  %v551_v15 = vadd.f32 %v1294_v10, %v1712_v30 }
 0x10a   : > { %v546_v16 = vadd.f32 %v1712_v30, %v545_v14  ;;  %1226 = vst [vmem:[%s1727_s17 + $0x28] sm:$0xff] %v1210_v11  }
 0x10b   : > { %v810_v28 = vmul.f32 %v1714_v31, %v551_v15  ;;  %v736_v39 = vmul.f32 %v1719_v33, %v551_v15 }
 0x10c   : > { %v1297_v17 = vpop.f32.mrb[14].mxu0  ;;  %v1215_v18 = vpack.c.bf16 %v551_v15, %v546_v16  ;;  %v809_v29 = vmul.f32 %v1714_v31, %v546_v16  ;;  %v735_v40 = vmul.f32 %v1719_v33, %v546_v16 }
 0x10d   : > { %827 = vadd.xlane.f32.xlu1 %v804_v12  ;;  %825 = vadd.xlane.f32.xlu0 %v803_v13  ;;  %v555_v21 = vpop.f32.mrb[15].mxu0  ;;  %v561_v23 = vadd.f32 %v1297_v17, %v1712_v30 }
 0x10e   : > { %1352 = vmatpush3.bf16.xpose.msra.mxu1 %v1200_v61  ;;  %v556_v24 = vadd.f32 %v1712_v30, %v555_v21  ;;  %1227 = vst [vmem:[%s1727_s17 + $0x30] sm:$0xff] %v1215_v18  }
 0x10f   : > { %1353 = vmatprep.subr.bf16.mxu1 %v1542_v22  ;;  %v812_v30 = vmul.f32 %v1714_v31, %v561_v23  ;;  %v738_v41 = vmul.f32 %v1719_v33, %v561_v23 }
 0x110   : > { %v1220_v25 = vpack.c.bf16 %v561_v23, %v556_v24  ;;  %v811_v32 = vmul.f32 %v1714_v31, %v556_v24  ;;  %v734_v31 = vmul.f32 %v1719_v33, %v541_v6  ;;  %v737_v42 = vmul.f32 %v1719_v33, %v556_v24 }
 0x111   : > { %831 = vadd.xlane.f32.xlu1 %v806_v19  ;;  %829 = vadd.xlane.f32.xlu0 %v805_v20 }
 0x112   : > { %1228 = vst [vmem:[%s1727_s17 + $0x38] sm:$0xff] %v1220_v25  }
 0x115   : > { %835 = vadd.xlane.f32.xlu1 %v808_v26  ;;  %833 = vadd.xlane.f32.xlu0 %v807_v27 }
 0x116   : > { %1355 = vmatpush3.bf16.xpose.msra.mxu1 %v1205_v4 }
 0x117   : > { %1356 = vmatprep.subr.bf16.mxu1 %v1542_v22 }
 0x119   : > { %839 = vadd.xlane.f32.xlu1 %v810_v28  ;;  %837 = vadd.xlane.f32.xlu0 %v809_v29 }
 0x11d   : > { %843 = vadd.xlane.f32.xlu1 %v812_v30  ;;  %841 = vadd.xlane.f32.xlu0 %v811_v32 }
 0x11e   : > { %1358 = vmatpush3.bf16.xpose.msra.mxu1 %v1210_v11 }
 0x11f   : > { %1359 = vmatprep.subr.bf16.mxu1 %v1542_v22 }
 0x121   : > { %753 = vadd.xlane.f32.xlu1 %v730_v34  ;;  %751 = vadd.xlane.f32.xlu0 %v729_v35 }
 0x125   : > { %757 = vadd.xlane.f32.xlu1 %v732_v36  ;;  %755 = vadd.xlane.f32.xlu0 %v731_v37 }
 0x126   : > { %1361 = vmatpush3.bf16.xpose.msra.mxu1 %v1215_v18 }
 0x127   : > { %1362 = vmatprep.subr.bf16.mxu1 %v1542_v22 }
 0x129   : > { %761 = vadd.xlane.f32.xlu1 %v734_v31  ;;  %759 = vadd.xlane.f32.xlu0 %v733_v38 }
 0x12d   : > { %765 = vadd.xlane.f32.xlu1 %v736_v39  ;;  %763 = vadd.xlane.f32.xlu0 %v735_v40 }
 0x12e   : > { %1364 = vmatpush3.bf16.xpose.msra.mxu1 %v1220_v25 }
 0x131   : > { %769 = vadd.xlane.f32.xlu1 %v738_v41  ;;  %767 = vadd.xlane.f32.xlu0 %v737_v42 }
 0x135   : > { %1331 = vmatmul.mubr.f32.vlgmr.msra.gmra.mrb[0].mxu1 %v644_v43 }
 0x182   : > { %v816_v22 = vpop.xlane.xlu0 %815  ;;  %v742_v44 = vpop.xlane.xlu1 %741 }
 0x183   : > { %v846_v45 = vmul.f32 0.2, %v816_v22  ;;  %773 = vst.msk [vmem:[%s1804_s24 + $0x8] sm:$0xff] %vm771_vm2, %v742_v44 }
 0x185   : > { %v862_v33 = vmax.f32 %v816_v22, %v846_v45 }
 0x186   : > { %v820_v46 = vpop.xlane.xlu1 %819  ;;  %v814_v47 = vpop.xlane.xlu0 %813 }
 0x187   : > { %v879_v48 = vmul.f32 1.442695, %v862_v33  ;;  %v848_v49 = vmul.f32 0.2, %v820_v46  ;;  %v845_v50 = vmul.f32 0.2, %v814_v47 }
 0x189   : > { %1414 = vpow2.f32 %v879_v48  ;;  %v864_v51 = vmax.f32 %v820_v46, %v848_v49  ;;  %v861_v52 = vmax.f32 %v814_v47, %v845_v50 }
 0x18a   : > { %v746_v53 = vpop.xlane.xlu1 %745  ;;  %v740_v54 = vpop.xlane.xlu0 %739 }
 0x18b   : > { %v883_v55 = vmul.f32 1.442695, %v864_v51  ;;  %v877_v56 = vmul.f32 1.442695, %v861_v52  ;;  %775 = vst.msk [vmem:[%s1804_s24 + $0x18] sm:$0xff] %vm771_vm2, %v746_v53  ;;  %772 = vst.msk [vmem:[%s1804_s24] sm:$0xff] %vm771_vm2, %v740_v54 }
 0x18d   : > { %1416 = vpow2.f32 %v883_v55 }
 0x18e   : > { %1459 = shalt.err (!%p1456_p3)
}
 0x18f   : > { %s1460_s17 = scalar_lea.hbm %s1812_s13, 1024  ;;  %s1464_s20 = scalar_lea.hbm %s1962_s5, 2048 }
 0x190   : > { %p1461_p4 = scmp.ne.s32.totalorder %s1812_s13, %s1460_s17  ;;  %p1465_p9 = scmp.lt.u32.totalorder %s1812_s13, %s1962_s5 }
 0x191   : > { %p1466_p10 = scmp.lt.u32.totalorder %s1464_s20, %s1460_s17  ;;  %p1468_p12 = scmp.lt.u32.totalorder %s1460_s17, %s1812_s13 }
 0x192   : > { %p1462_p7 = pnand %p1461_p4, %p1632_p5 }
 0x193   : > { %p1467_p11 = por %p1466_p10, %p1465_p9 }
 0x194   : > { %p1463_p8 = pneg %p1462_p7 }
 0x195   : > { %p1469_p13 = por %p1468_p12, %p1467_p11 }
 0x197   : > { %p1470_p0 = pnand %p1469_p13, %p1463_p8 }
 0x199   : > { %1473 = shalt.err (!%p1470_p0)
}
 0x19a   : > { %s1546_s19 = smov 64   ;;  %s1547_s25 = smov 4   ;;  %1418 = vpow2.f32 %v877_v56  ;;  %v818_v57 = vpop.xlane.xlu1 %817  ;;  %v744_v58 = vpop.xlane.xlu0 %743 }
 0x19b   : > { %s1968_s26 = scalar_lea.sflag [#allocation3], %s1707_s22  ;;  %v847_v59 = vmul.f32 0.2, %v818_v57  ;;  %774 = vst.msk [vmem:[%s1804_s24 + $0x10] sm:$0xff] %vm771_vm2, %v744_v58  ;;  %s1851_s12 = scalar_lea.vmem %s1965_s8, %s1659_s10  ;;  %v1415_v63 = vpop.eup %1414 }
 0x19c   : > { %1365 = dma.vmem_to_hbm [thread:$0]  (%p1632_p5), %s1819_s18, 1024, %s1812_s13, %s1968_s26, %s1546_s19, %s1546_s19, %s1547_s25   ;;  %v1417_v7 = vpop.eup %1416 }
 0x19d   : > { %v863_v60 = vmax.f32 %v818_v57, %v847_v59  ;;  %910 = vst.msk [vmem:[%s1851_s12 + $0x8] sm:$0xff] %vm771_vm2, %v1415_v63  ;;  %912 = vst.msk [vmem:[%s1851_s12 + $0x18] sm:$0xff] %vm771_vm2, %v1417_v7  ;;  %s309_s10 = scalar_lea.vmem [#allocation4], %s1707_s22  ;;  %s1916_s21 = scalar_lea.hbm %s1963_s6, %s1652_s23 }
 0x19e   : > { %v824_v61 = vpop.xlane.xlu1 %823  ;;  %v822_v62 = vpop.xlane.xlu0 %821  ;;  %s969_s13 = sshll.u32 %s309_s10, 4  ;;  %s931_s19 = scalar_lea.sflag [#allocation5], %s1707_s22  ;;  %s1910_s13 = int_to_ptr.vmem [resolvable:$true] %s969_s13 }
 0x19f   : > { %v881_v0 = vmul.f32 1.442695, %v863_v60  ;;  %v850_v1 = vmul.f32 0.2, %v824_v61  ;;  %v849_v2 = vmul.f32 0.2, %v822_v62 }
 0x1a0   : > { %s1474_s25 = scalar_lea.vmem %s1910_s13, 16 }
 0x1a1   : > { %1420 = vpow2.f32 %v881_v0  ;;  %v866_v3 = vmax.f32 %v824_v61, %v850_v1  ;;  %v865_v4 = vmax.f32 %v822_v62, %v849_v2  ;;  %p1475_p1 = scmp.ne.s32.totalorder %s1910_s13, %s1474_s25 }
 0x1a2   : > { %v750_v5 = vpop.xlane.xlu1 %749  ;;  %v748_v6 = vpop.xlane.xlu0 %747 }
 0x1a3   : > { %v887_v8 = vmul.f32 1.442695, %v866_v3  ;;  %v885_v9 = vmul.f32 1.442695, %v865_v4  ;;  %777 = vst.msk [vmem:[%s1804_s24 + $0x28] sm:$0xff] %vm771_vm2, %v750_v5  ;;  %776 = vst.msk [vmem:[%s1804_s24 + $0x20] sm:$0xff] %vm771_vm2, %v748_v6  ;;  %p1476_p2 = pnand %p1475_p1, %p1632_p5 }
 0x1a4   : > { %v1419_v10 = vpop.eup %1418 }
 0x1a5   : > { %909 = vst.msk [vmem:[%s1851_s12] sm:$0xff] %vm771_vm2, %v1419_v10  ;;  %1422 = vpow2.f32 %v887_v8  ;;  %p1477_p3 = pneg %p1476_p2 }
 0x1a6   : > { %1424 = vpow2.f32 %v885_v9  ;;  %v828_v11 = vpop.xlane.xlu1 %827  ;;  %v826_v12 = vpop.xlane.xlu0 %825 }
 0x1a7   : > { %v852_v13 = vmul.f32 0.2, %v828_v11  ;;  %v851_v14 = vmul.f32 0.2, %v826_v12 }
 0x1a9   : > { %v868_v15 = vmax.f32 %v828_v11, %v852_v13  ;;  %v867_v16 = vmax.f32 %v826_v12, %v851_v14 }
 0x1aa   : > { %v832_v17 = vpop.xlane.xlu1 %831  ;;  %v830_v18 = vpop.xlane.xlu0 %829 }
 0x1ab   : > { %v1421_v19 = vpop.eup %1420  ;;  %v891_v20 = vmul.f32 1.442695, %v868_v15  ;;  %v889_v21 = vmul.f32 1.442695, %v867_v16  ;;  %v854_v23 = vmul.f32 0.2, %v832_v17 }
 0x1ac   : > { %911 = vst.msk [vmem:[%s1851_s12 + $0x10] sm:$0xff] %vm771_vm2, %v1421_v19  ;;  %v853_v24 = vmul.f32 0.2, %v830_v18 }
 0x1ad   : > { %1426 = vpow2.f32 %v891_v20  ;;  %v870_v25 = vmax.f32 %v832_v17, %v854_v23 }
 0x1ae   : > { %1428 = vpow2.f32 %v889_v21  ;;  %v869_v26 = vmax.f32 %v830_v18, %v853_v24  ;;  %v836_v27 = vpop.xlane.xlu1 %835  ;;  %v834_v28 = vpop.xlane.xlu0 %833 }
 0x1af   : > { %v1423_v29 = vpop.eup %1422  ;;  %v895_v30 = vmul.f32 1.442695, %v870_v25  ;;  %v856_v32 = vmul.f32 0.2, %v836_v27  ;;  %v855_v34 = vmul.f32 0.2, %v834_v28 }
 0x1b0   : > { %v1425_v35 = vpop.eup %1424  ;;  %914 = vst.msk [vmem:[%s1851_s12 + $0x28] sm:$0xff] %vm771_vm2, %v1423_v29  ;;  %v893_v36 = vmul.f32 1.442695, %v869_v26 }
 0x1b1   : > { %913 = vst.msk [vmem:[%s1851_s12 + $0x20] sm:$0xff] %vm771_vm2, %v1425_v35  ;;  %1430 = vpow2.f32 %v895_v30  ;;  %v872_v37 = vmax.f32 %v836_v27, %v856_v32  ;;  %v871_v31 = vmax.f32 %v834_v28, %v855_v34 }
 0x1b2   : > { %1432 = vpow2.f32 %v893_v36  ;;  %v840_v38 = vpop.xlane.xlu1 %839  ;;  %v838_v39 = vpop.xlane.xlu0 %837 }
 0x1b3   : > { %v899_v40 = vmul.f32 1.442695, %v872_v37  ;;  %v897_v41 = vmul.f32 1.442695, %v871_v31  ;;  %v858_v42 = vmul.f32 0.2, %v840_v38 }
 0x1b4   : > { %v857_v43 = vmul.f32 0.2, %v838_v39 }
 0x1b5   : > { %1434 = vpow2.f32 %v899_v40  ;;  %v874_v22 = vmax.f32 %v840_v38, %v858_v42 }
 0x1b6   : > { %1436 = vpow2.f32 %v897_v41  ;;  %v873_v44 = vmax.f32 %v838_v39, %v857_v43  ;;  %v844_v45 = vpop.xlane.xlu1 %843  ;;  %v842_v33 = vpop.xlane.xlu0 %841 }
 0x1b7   : > { %v1427_v46 = vpop.eup %1426  ;;  %v903_v47 = vmul.f32 1.442695, %v874_v22  ;;  %v860_v48 = vmul.f32 0.2, %v844_v45  ;;  %v859_v49 = vmul.f32 0.2, %v842_v33 }
 0x1b8   : > { %v1429_v50 = vpop.eup %1428  ;;  %916 = vst.msk [vmem:[%s1851_s12 + $0x38] sm:$0xff] %vm771_vm2, %v1427_v46  ;;  %v901_v51 = vmul.f32 1.442695, %v873_v44 }
 0x1b9   : > { %915 = vst.msk [vmem:[%s1851_s12 + $0x30] sm:$0xff] %vm771_vm2, %v1429_v50  ;;  %1438 = vpow2.f32 %v903_v47  ;;  %v876_v52 = vmax.f32 %v844_v45, %v860_v48  ;;  %v875_v53 = vmax.f32 %v842_v33, %v859_v49 }
 0x1ba   : > { %1440 = vpow2.f32 %v901_v51  ;;  %v754_v54 = vpop.xlane.xlu1 %753  ;;  %v752_v55 = vpop.xlane.xlu0 %751 }
 0x1bb   : > { %v1431_v56 = vpop.eup %1430  ;;  %v907_v57 = vmul.f32 1.442695, %v876_v52  ;;  %v905_v58 = vmul.f32 1.442695, %v875_v53  ;;  %779 = vst.msk [vmem:[%s1804_s24 + $0x38] sm:$0xff] %vm771_vm2, %v754_v54  ;;  %778 = vst.msk [vmem:[%s1804_s24 + $0x30] sm:$0xff] %vm771_vm2, %v752_v55 }
 0x1bc   : > { %v1433_v59 = vpop.eup %1432  ;;  %918 = vst.msk [vmem:[%s1851_s12 + $0x48] sm:$0xff] %vm771_vm2, %v1431_v56 }
 0x1bd   : > { %917 = vst.msk [vmem:[%s1851_s12 + $0x40] sm:$0xff] %vm771_vm2, %v1433_v59  ;;  %1442 = vpow2.f32 %v907_v57 }
 0x1be   : > { %1444 = vpow2.f32 %v905_v58  ;;  %v758_v60 = vpop.xlane.xlu1 %757  ;;  %v756_v61 = vpop.xlane.xlu0 %755 }
 0x1bf   : > { %v1435_v62 = vpop.eup %1434  ;;  %781 = vst.msk [vmem:[%s1804_s24 + $0x48] sm:$0xff] %vm771_vm2, %v758_v60  ;;  %780 = vst.msk [vmem:[%s1804_s24 + $0x40] sm:$0xff] %vm771_vm2, %v756_v61 }
 0x1c0   : > { %v1437_v63 = vpop.eup %1436  ;;  %920 = vst.msk [vmem:[%s1851_s12 + $0x58] sm:$0xff] %vm771_vm2, %v1435_v62 }
 0x1c1   : > { %919 = vst.msk [vmem:[%s1851_s12 + $0x50] sm:$0xff] %vm771_vm2, %v1437_v63 }
 0x1c2   : > { %v762_v0 = vpop.xlane.xlu1 %761  ;;  %v760_v1 = vpop.xlane.xlu0 %759 }
 0x1c3   : > { %v1439_v2 = vpop.eup %1438  ;;  %783 = vst.msk [vmem:[%s1804_s24 + $0x58] sm:$0xff] %vm771_vm2, %v762_v0  ;;  %782 = vst.msk [vmem:[%s1804_s24 + $0x50] sm:$0xff] %vm771_vm2, %v760_v1 }
 0x1c4   : > { %v1441_v3 = vpop.eup %1440  ;;  %922 = vst.msk [vmem:[%s1851_s12 + $0x68] sm:$0xff] %vm771_vm2, %v1439_v2 }
 0x1c5   : > { %921 = vst.msk [vmem:[%s1851_s12 + $0x60] sm:$0xff] %vm771_vm2, %v1441_v3 }
 0x1c6   : > { %v766_v4 = vpop.xlane.xlu1 %765  ;;  %v764_v5 = vpop.xlane.xlu0 %763 }
 0x1c7   : > { %v1443_v6 = vpop.eup %1442  ;;  %785 = vst.msk [vmem:[%s1804_s24 + $0x68] sm:$0xff] %vm771_vm2, %v766_v4  ;;  %784 = vst.msk [vmem:[%s1804_s24 + $0x60] sm:$0xff] %vm771_vm2, %v764_v5 }
 0x1c8   : > { %v1445_v7 = vpop.eup %1444  ;;  %924 = vst.msk [vmem:[%s1851_s12 + $0x78] sm:$0xff] %vm771_vm2, %v1443_v6 }
 0x1c9   : > { %923 = vst.msk [vmem:[%s1851_s12 + $0x70] sm:$0xff] %vm771_vm2, %v1445_v7 }
 0x1ca   : > { %v770_v8 = vpop.xlane.xlu1 %769  ;;  %v768_v9 = vpop.xlane.xlu0 %767 }
 0x1cb   : > { %787 = vst.msk [vmem:[%s1804_s24 + $0x78] sm:$0xff] %vm771_vm2, %v770_v8  ;;  %786 = vst.msk [vmem:[%s1804_s24 + $0x70] sm:$0xff] %vm771_vm2, %v768_v9  ;;  %s1548_s24 = smov [#allocation4]  }
 0x1cc   : > { %s1478_s26 = sshll.u32 %s1548_s24, 4  ;;  %s1479_s26 = int_to_ptr.vmem [resolvable:$false] %s1478_s26 }
 0x1cd   : > { %s1480_s9 = scalar_lea.vmem %s1479_s26, 32  ;;  %p1481_p4 = scmp.lt.s32.totalorder %s1910_s13, %s1479_s26 }
 0x1ce   : > { %p1482_p7 = scmp.lt.s32.totalorder %s1480_s9, %s1474_s25 }
 0x1d0   : > { %p1483_p8 = por %p1482_p7, %p1481_p4 }
 0x1d2   : > { %p1484_p9 = pnand %p1483_p8, %p1477_p3 }
 0x208   : > { %v711_v10 = vpop.f32.mrb[0].mxu1 }
 0x209   : > { %715 = vst [vmem:[%s309_s10] sm:$0x1] %v711_v10  ;;  %v1332_v11 = vpop.f32.mrb[1].mxu1 }
 0x20a   : > { %1487 = shalt.err (!%p1484_p9)
}
 0x20b   : > { %s1488_s23 = scalar_lea.hbm %s1916_s21, 16  ;;  %s1492_s12 = scalar_lea.hbm %s1963_s6, 32 }
 0x20c   : > { %p1489_p10 = scmp.ne.s32.totalorder %s1916_s21, %s1488_s23  ;;  %p1493_p13 = scmp.lt.u32.totalorder %s1916_s21, %s1963_s6 }
 0x20d   : > { %p1494_p0 = scmp.lt.u32.totalorder %s1492_s12, %s1488_s23  ;;  %p1496_p2 = scmp.lt.u32.totalorder %s1488_s23, %s1916_s21 }
 0x20e   : > { %p1490_p11 = pnand %p1489_p10, %p1632_p5 }
 0x20f   : > { %p1495_p1 = por %p1494_p0, %p1493_p13 }
 0x210   : > { %p1491_p12 = pneg %p1490_p11 }
 0x211   : > { %p1497_p3 = por %p1496_p2, %p1495_p1 }
 0x213   : > { %p1498_p4 = pnand %p1497_p3, %p1491_p12 }
 0x215   : > { %1501 = shalt.err (!%p1498_p4)
}
 0x216   : > { %1366 = dma.vmem_to_hbm [thread:$0]  (%p1632_p5), %s1910_s13, 16, %s1916_s21, %s931_s19  }
 0x217 PF: > { %p1376_p7 = scmp.ge.s32.totalorder %s1540_s30, 2  ;;  %s989_s20 = sand.u32 1, %s1528_s27  }
 0x218   : > { %s990_s25 = scalar_lea.sflag [#allocation3], %s989_s20 }
 0x219   : > { %p1370_p8 = pnand %p1376_p7, %p1636_p6 }
 0x21b   : > { %1519 = dma.done.wait (!%p1370_p8), %s990_s25, 1024  }
 0x21c   : > { %1521 = vsyncadd (!%p1370_p8), %s990_s25, 4294966272  ;;  %s999_s24 = scalar_lea.sflag [#allocation5], %s989_s20 }
 0x21d   : > { %1523 = dma.done.wait (!%p1370_p8), %s999_s24, 16  }
 0x21e   : > { %1525 = vsyncadd (!%p1370_p8), %s999_s24, 4294967280  ;;  %p22_p5 = scmp.ge.s32.totalorder %s1619_s11, 4   ;;  %s1969_s27 = smov %s1532_s28 }
 0x21f   : > { %s1970_s28 = smov %s1536_s29  ;;  %s1971_s29 = smov %s1630_s14 }
 0x220   : > { %s1972_s30 = smov %s1619_s11  ;;  %24 = sbr.rel (!%p22_p5) target bundleno = 5 (0x5), region = 116 }
 0x227   :  { %1019 = vsyncpa [#allocation3], 1 }
 0x228   :  { %1021 = vsyncpa [#allocation3 + $0x1], 1 }
 0x229   :  { %1022 = vsyncpa [#allocation5], 1 }
 0x22a   :  { %1024 = vsyncpa [#allocation5 + $0x1], 1 }

</bundles_post_ra>
